<compile_context>
chip_gen: v7x
topology: tpu7x:2x2x1
jax: 0.10.0
libtpu: 0.0.40
codegen_flags: <defaults>
</compile_context>

<pallas_src>
import functools

import jax
import jax.numpy as jnp
from jax.experimental import pallas as pl
from jax.experimental.pallas import tpu as pltpu

_LANE = 128


def _round_up(n, m):
    return ((n + m - 1) // m) * m


def _pad_to(a, shape):
    pads = [(0, t - s) for s, t in zip(a.shape, shape)]
    return jnp.pad(a, pads)


def prepare_params(params):
    """Pad hidden dim to lane width and cast matmul operands to bf16, ONCE.

    Feature padding of the hidden dim only touches resident weights (no per-call
    HBM activation traffic); state/action dims are left unpadded.
    """
    S, H = params["w1"].shape
    A = params["w3"].shape[1]
    Hp = _round_up(H, _LANE)
    return {
        "w1": _pad_to(params["w1"], (S, Hp)).astype(jnp.bfloat16),
        "b1": _pad_to(params["b1"].reshape(1, -1), (1, Hp)).astype(jnp.float32),
        "w2": _pad_to(params["w2"], (Hp, Hp)).astype(jnp.bfloat16),
        "b2": _pad_to(params["b2"].reshape(1, -1), (1, Hp)).astype(jnp.float32),
        "w3": _pad_to(params["w3"], (Hp, A)).astype(jnp.bfloat16),
        "b3": params["b3"].reshape(1, -1).astype(jnp.float32),
    }


def _policy_kernel(x_ref, w1_ref, b1_ref, w2_ref, b2_ref, w3_ref, b3_ref,
                   out_ref, *, max_action):
    # x arrives f32 with only the real state columns; cast to bf16 for the MXU.
    x = x_ref[...].astype(jnp.bfloat16)                               # (TB, S)

    h1 = jnp.dot(x, w1_ref[...], preferred_element_type=jnp.float32) + b1_ref[...]
    h1 = jnp.maximum(h1, 0.0).astype(jnp.bfloat16)                    # ReLU

    h2 = jnp.dot(h1, w2_ref[...], preferred_element_type=jnp.float32) + b2_ref[...]
    h2 = jnp.maximum(h2, 0.0).astype(jnp.bfloat16)                    # ReLU

    mu = jnp.dot(h2, w3_ref[...], preferred_element_type=jnp.float32) + b3_ref[...]

    # tanh/scale only over the A real action columns (no padded EUP work).
    out_ref[...] = (jnp.tanh(mu) * max_action).astype(out_ref.dtype)


def policy_forward(x, prepared, max_action, *, block_b=512):
    """x: (B, state_dim) float32. prepared: output of prepare_params (bf16/f32)."""
    B, S = x.shape
    assert prepared["w1"].shape[0] == S
    A = prepared["w3"].shape[1]

    # Balanced batch tiles: minimize padding; keep grid even when >1 so the
    # "parallel" axis shards evenly across v7x's two TensorCores.
    nt = pl.cdiv(B, block_b)
    if nt > 1 and nt % 2:
        nt += 1
    TB = _round_up(pl.cdiv(B, nt), 8)
    Bp = TB * nt

    xb = x if Bp == B else jnp.pad(x, ((0, Bp - B), (0, 0)))

    # Weights/biases: full block, constant index -> resident across the grid.
    resident = lambda a: pl.BlockSpec(a.shape, lambda i: (0, 0))

    kernel = functools.partial(_policy_kernel, max_action=float(max_action))

    out = pl.pallas_call(
        kernel,
        out_shape=jax.ShapeDtypeStruct((Bp, A), jnp.float32),
        grid=(nt,),
        in_specs=[
            pl.BlockSpec((TB, S), lambda i: (i, 0)),   # x tile (pipelined)
            resident(prepared["w1"]), resident(prepared["b1"]),
            resident(prepared["w2"]), resident(prepared["b2"]),
            resident(prepared["w3"]), resident(prepared["b3"]),
        ],
        out_specs=pl.BlockSpec((TB, A), lambda i: (i, 0)),
        compiler_params=pltpu.CompilerParams(
            dimension_semantics=("parallel",),
            vmem_limit_bytes=32 * 1024 * 1024),  # budget against v7x (64 MiB phys)
    )(xb, prepared["w1"], prepared["b1"], prepared["w2"], prepared["b2"],
      prepared["w3"], prepared["b3"])

    return out if Bp == B else out[:B]


def init_params(key, state_dim, action_dim, hidden_size):
    """Deterministic init mimicking nn.Linear's uniform(-1/sqrt(fan_in), +...)."""
    def linear(k, fan_in, fan_out):
        kw, kb = jax.random.split(k)
        bound = 1.0 / jnp.sqrt(fan_in)
        w = jax.random.uniform(kw, (fan_in, fan_out), jnp.float32, -bound, bound)
        b = jax.random.uniform(kb, (1, fan_out), jnp.float32, -bound, bound)
        return w, b

    k1, k2, k3 = jax.random.split(key, 3)
    w1, b1 = linear(k1, state_dim, hidden_size)
    w2, b2 = linear(k2, hidden_size, hidden_size)
    w3, b3 = linear(k3, hidden_size, action_dim)
    return {"w1": w1, "b1": b1, "w2": w2, "b2": b2, "w3": w3, "b3": b3}


def policy_reference(x, params, max_action):
    h1 = jnp.maximum(x @ params["w1"] + params["b1"], 0.0)
    h2 = jnp.maximum(h1 @ params["w2"] + params["b2"], 0.0)
    mu = h2 @ params["w3"] + params["b3"]
    return jnp.tanh(mu) * max_action


if __name__ == "__main__":
    key = jax.random.PRNGKey(0)
    k_x, k_p, k_x2 = jax.random.split(key, 3)

    batch = 8
    state_dim = 16
    action_dim = 8
    hidden_size = 32
    max_action = 2.0

    params = init_params(k_p, state_dim, action_dim, hidden_size)
    prepared = jax.block_until_ready(prepare_params(params))  # one-time cost

    # Small-batch case (single grid step).
    x = jax.random.normal(k_x, (batch, state_dim), jnp.float32)
    out = policy_forward(x, prepared, max_action)
    out = jax.block_until_ready(out)
    ref = policy_reference(x, params, max_action)
    assert out.shape == (batch, action_dim)
    # bf16 matmul operands (f32 accumulation) -> loosen tolerance vs f32 ref.
    assert jnp.allclose(out, ref, atol=5e-2, rtol=5e-2), "mismatch vs reference (small batch)"

    # Larger batch exercising the pipelined batch grid with balanced (even) tiles.
    batch2 = 384
    x2 = jax.random.normal(k_x2, (batch2, state_dim), jnp.float32)
    out2 = policy_forward(x2, prepared, max_action, block_b=128)
    out2 = jax.block_until_ready(out2)
    ref2 = policy_reference(x2, params, max_action)
    assert out2.shape == (batch2, action_dim)
    assert jnp.allclose(out2, ref2, atol=5e-2, rtol=5e-2), "mismatch vs reference (tiled batch)"

    print("KERNEL_OK")
</pallas_src>

<mosaic_0001>
module attributes {stable_mosaic.version = 11 : i64} {
  func.func @_policy_kernel(%arg0: i32, %arg1: memref<8x16xf32, #tpu.memory_space<vmem>>, %arg2: memref<16x128xbf16, #tpu.memory_space<vmem>>, %arg3: memref<1x128xf32, #tpu.memory_space<vmem>>, %arg4: memref<128x128xbf16, #tpu.memory_space<vmem>>, %arg5: memref<1x128xf32, #tpu.memory_space<vmem>>, %arg6: memref<128x8xbf16, #tpu.memory_space<vmem>>, %arg7: memref<1x8xf32, #tpu.memory_space<vmem>>, %arg8: memref<8x8xf32, #tpu.memory_space<vmem>>) attributes {dimension_semantics = [#tpu.dimension_semantics<parallel>], iteration_bounds = array<i64: 1>, scalar_prefetch = 0 : i64, scratch_operands = 0 : i64, tpu.core_type = #tpu.core_type<tc>, window_params = [{transform_indices = @transform_0, window_bounds = array<i64: 8, 16>}, {pipeline_mode = #tpu.pipeline_mode<synchronous>, transform_indices = @transform_1, window_bounds = array<i64: 16, 128>}, {pipeline_mode = #tpu.pipeline_mode<synchronous>, transform_indices = @transform_2, window_bounds = array<i64: 1, 128>}, {pipeline_mode = #tpu.pipeline_mode<synchronous>, transform_indices = @transform_3, window_bounds = array<i64: 128, 128>}, {pipeline_mode = #tpu.pipeline_mode<synchronous>, transform_indices = @transform_4, window_bounds = array<i64: 1, 128>}, {pipeline_mode = #tpu.pipeline_mode<synchronous>, transform_indices = @transform_5, window_bounds = array<i64: 128, 8>}, {pipeline_mode = #tpu.pipeline_mode<synchronous>, transform_indices = @transform_6, window_bounds = array<i64: 1, 8>}, {transform_indices = @transform_7, window_bounds = array<i64: 8, 8>}]} {
    %c0 = arith.constant 0 : index
    %c0_0 = arith.constant 0 : index
    %0 = vector.load %arg1[%c0, %c0_0] : memref<8x16xf32, #tpu.memory_space<vmem>>, vector<8x16xf32>
    %1 = arith.truncf %0 : vector<8x16xf32> to vector<8x16xbf16>
    %c0_1 = arith.constant 0 : index
    %c0_2 = arith.constant 0 : index
    %2 = vector.load %arg2[%c0_1, %c0_2] : memref<16x128xbf16, #tpu.memory_space<vmem>>, vector<16x128xbf16>
    %cst = arith.constant dense<0.000000e+00> : vector<8x128xf32>
    %3 = tpu.matmul %1, %2, %cst {dimension_numbers = #tpu.dot_dimension_numbers<[1], [0], [0], [1], [0, 0, 1, 1], [], []>} : vector<8x16xbf16>, vector<16x128xbf16>, vector<8x128xf32> -> vector<8x128xf32>
    %c0_3 = arith.constant 0 : index
    %c0_4 = arith.constant 0 : index
    %4 = vector.load %arg3[%c0_3, %c0_4] : memref<1x128xf32, #tpu.memory_space<vmem>>, vector<1x128xf32>
    %5 = vector.broadcast %4 : vector<1x128xf32> to vector<8x128xf32>
    %6 = arith.addf %3, %5 : vector<8x128xf32>
    %cst_5 = arith.constant 0.000000e+00 : f32
    %7 = vector.broadcast %cst_5 : f32 to vector<8x128xf32>
    %8 = arith.maximumf %6, %7 : vector<8x128xf32>
    %9 = arith.truncf %8 : vector<8x128xf32> to vector<8x128xbf16>
    %c0_6 = arith.constant 0 : index
    %c0_7 = arith.constant 0 : index
    %10 = vector.load %arg4[%c0_6, %c0_7] : memref<128x128xbf16, #tpu.memory_space<vmem>>, vector<128x128xbf16>
    %cst_8 = arith.constant dense<0.000000e+00> : vector<8x128xf32>
    %11 = tpu.matmul %9, %10, %cst_8 {dimension_numbers = #tpu.dot_dimension_numbers<[1], [0], [0], [1], [0, 0, 1, 1], [], []>} : vector<8x128xbf16>, vector<128x128xbf16>, vector<8x128xf32> -> vector<8x128xf32>
    %c0_9 = arith.constant 0 : index
    %c0_10 = arith.constant 0 : index
    %12 = vector.load %arg5[%c0_9, %c0_10] : memref<1x128xf32, #tpu.memory_space<vmem>>, vector<1x128xf32>
    %13 = vector.broadcast %12 : vector<1x128xf32> to vector<8x128xf32>
    %14 = arith.addf %11, %13 : vector<8x128xf32>
    %cst_11 = arith.constant 0.000000e+00 : f32
    %15 = vector.broadcast %cst_11 : f32 to vector<8x128xf32>
    %16 = arith.maximumf %14, %15 : vector<8x128xf32>
    %17 = arith.truncf %16 : vector<8x128xf32> to vector<8x128xbf16>
    %c0_12 = arith.constant 0 : index
    %c0_13 = arith.constant 0 : index
    %18 = vector.load %arg6[%c0_12, %c0_13] : memref<128x8xbf16, #tpu.memory_space<vmem>>, vector<128x8xbf16>
    %cst_14 = arith.constant dense<0.000000e+00> : vector<8x8xf32>
    %19 = tpu.matmul %17, %18, %cst_14 {dimension_numbers = #tpu.dot_dimension_numbers<[1], [0], [0], [1], [0, 0, 1, 1], [], []>} : vector<8x128xbf16>, vector<128x8xbf16>, vector<8x8xf32> -> vector<8x8xf32>
    %c0_15 = arith.constant 0 : index
    %c0_16 = arith.constant 0 : index
    %20 = vector.load %arg7[%c0_15, %c0_16] : memref<1x8xf32, #tpu.memory_space<vmem>>, vector<1x8xf32>
    %21 = vector.broadcast %20 : vector<1x8xf32> to vector<8x8xf32>
    %22 = arith.addf %19, %21 : vector<8x8xf32>
    %23 = math.tanh %22 : vector<8x8xf32>
    %cst_17 = arith.constant 2.000000e+00 : f32
    %24 = vector.broadcast %cst_17 : f32 to vector<8x8xf32>
    %25 = arith.mulf %23, %24 : vector<8x8xf32>
    %c0_18 = arith.constant 0 : index
    %c0_19 = arith.constant 0 : index
    %26 = vector.load %arg8[%c0_18, %c0_19] : memref<8x8xf32, #tpu.memory_space<vmem>>, vector<8x8xf32>
    tpu.vector_store %arg8[%c0_18, %c0_19], %25 {strides = array<i32>} : memref<8x8xf32, #tpu.memory_space<vmem>>, vector<8x8xf32>,
    return
  }
  func.func @transform_0(%arg0: i32) -> (i32, i32) {
    %c0_i32 = arith.constant 0 : i32
    %c0_i32_0 = arith.constant 0 : i32
    return %arg0, %c0_i32 : i32, i32
  }
  func.func @transform_1(%arg0: i32) -> (i32, i32) {
    %c0_i32 = arith.constant 0 : i32
    %c0_i32_0 = arith.constant 0 : i32
    %c0_i32_1 = arith.constant 0 : i32
    return %c0_i32, %c0_i32_0 : i32, i32
  }
  func.func @transform_2(%arg0: i32) -> (i32, i32) {
    %c0_i32 = arith.constant 0 : i32
    %c0_i32_0 = arith.constant 0 : i32
    %c0_i32_1 = arith.constant 0 : i32
    return %c0_i32, %c0_i32_0 : i32, i32
  }
  func.func @transform_3(%arg0: i32) -> (i32, i32) {
    %c0_i32 = arith.constant 0 : i32
    %c0_i32_0 = arith.constant 0 : i32
    %c0_i32_1 = arith.constant 0 : i32
    return %c0_i32, %c0_i32_0 : i32, i32
  }
  func.func @transform_4(%arg0: i32) -> (i32, i32) {
    %c0_i32 = arith.constant 0 : i32
    %c0_i32_0 = arith.constant 0 : i32
    %c0_i32_1 = arith.constant 0 : i32
    return %c0_i32, %c0_i32_0 : i32, i32
  }
  func.func @transform_5(%arg0: i32) -> (i32, i32) {
    %c0_i32 = arith.constant 0 : i32
    %c0_i32_0 = arith.constant 0 : i32
    %c0_i32_1 = arith.constant 0 : i32
    return %c0_i32, %c0_i32_0 : i32, i32
  }
  func.func @transform_6(%arg0: i32) -> (i32, i32) {
    %c0_i32 = arith.constant 0 : i32
    %c0_i32_0 = arith.constant 0 : i32
    %c0_i32_1 = arith.constant 0 : i32
    return %c0_i32, %c0_i32_0 : i32, i32
  }
  func.func @transform_7(%arg0: i32) -> (i32, i32) {
    %c0_i32 = arith.constant 0 : i32
    %c0_i32_0 = arith.constant 0 : i32
    return %arg0, %c0_i32 : i32, i32
  }
}

</mosaic_0001>

<bundles_post_ra>
// kernel: tpu_custom_call.1
= control target key start
LH: loop header
LB: loop body
LE: loop exit
PB: predicated region body
PF: predicated region fallthrough
CT: control target
= control target key end

     0   :  { %12 = vsyncpa [#allocation3], 0  ;;  %s658_s0 = inlined_call_operand.vmem [shape: f32[8,16], index: 0, kind: input, shape index: {}]   ;;  %s659_s1 = inlined_call_operand.hbm [shape: bf16[16,128], index: 1, kind: input, shape index: {}]   ;;  %s660_s2 = inlined_call_operand.vmem [shape: f32[1,128], index: 2, kind: input, shape index: {}]   ;;  %s661_s3 = inlined_call_operand.vmem [shape: bf16[128,128], index: 3, kind: input, shape index: {}]   ;;  %s662_s4 = inlined_call_operand.vmem [shape: f32[1,128], index: 4, kind: input, shape index: {}]   ;;  %s663_s5 = inlined_call_operand.vmem [shape: bf16[128,8], index: 5, kind: input, shape index: {}]   ;;  %s664_s6 = inlined_call_operand.vmem [shape: f32[1,8], index: 6, kind: input, shape index: {}]   ;;  %s665_s7 = inlined_call_operand.hbm [shape: f32[8,8], index: 7, kind: output, shape index: {}]  }
   0x1   :  { %13 = vsyncpa [#allocation4], 0  ;;  %s508_s24 = smov [#allocation2]   ;;  %s460_s28 = scalar_lea.hbm %s659_s1, 128 }
   0x2   :  { %s21_s25 = sshll.u32 %s508_s24, 4  ;;  %p461_p0 = scmp.ne.s32.totalorder %s659_s1, %s460_s28  ;;  %s22_s25 = int_to_ptr.vmem [resolvable:$true] %s21_s25 }
   0x3   :  { %p464_p1 = scmp.lt.u32.totalorder %s460_s28, %s659_s1 }
   0x5   :  { %p466_p2 = pnand %p464_p1, %p461_p0 }
   0x7   :  { %469 = shalt.err (!%p466_p2)
}
   0x8   :  { %s470_s10 = scalar_lea.vmem %s22_s25, 128  ;;  %p475_p4 = scmp.lt.s32.totalorder %s22_s25, %s22_s25 }
   0x9   :  { %p471_p3 = scmp.ne.s32.totalorder %s22_s25, %s470_s10  ;;  %p476_p5 = scmp.lt.s32.totalorder %s470_s10, %s470_s10 }
   0xb   :  { %p477_p6 = por %p476_p5, %p475_p4 }
   0xd   :  { %p478_p7 = pnand %p477_p6, %p471_p3 }
   0xf   :  { %481 = shalt.err (!%p478_p7)
}
  0x10   :  { %s509_s11 = smov 64   ;;  %s510_s12 = smov 4  }
  0x11   :  { %27 = dma.hbm_to_vmem [thread:$0]  %s659_s1, 128, %s22_s25, [#allocation3], %s509_s11, %s509_s11, %s510_s12  }
  0x12   :  { %504 = dma.done.wait [#allocation3], 128  }
  0x13   :  { %505 = vsyncadd [#allocation3], 4294967168  ;;  %v511_v0 = vmov 0.0   ;;  %vm512_vm0 = vmmov 0   ;;  %v441_v1 = vld [vmem:[#allocation2] sm:$0xff]   ;;  %vm59_vm1 = vcmask 130048  }
  0x14   :  { %389 = vmatprep.subr.bf16.mxu0 %v511_v0  ;;  %391 = vmatprep.mubr.msk.bf16.mxu0 %vm512_vm0, %v511_v0  ;;  %v42_v2 = vld [vmem:[%s658_s0] sm:$0xff]  ;;  %v443_v5 = vld [vmem:[%s661_s3 + $0x8] sm:$0xff]   ;;  %v444_v6 = vld [vmem:[%s661_s3 + $0x10] sm:$0xff]   ;;  %vm331_vm2 = vcmask 64512  }
  0x15   :  { %395 = vmatprep.subr.bf16.mxu1 %v511_v0  ;;  %411 = vmatprep.mubr.msk.bf16.mxu1 %vm512_vm0, %v511_v0  ;;  %v43_v3 = vpack.c.bf16 %v42_v2, %v42_v2  ;;  %v442_v4 = vld [vmem:[%s661_s3] sm:$0xff]   ;;  %v445_v7 = vld [vmem:[%s661_s3 + $0x18] sm:$0xff]   ;;  %v447_v9 = vld [vmem:[%s661_s3 + $0x28] sm:$0xff]  }
  0x16   :  { %390 = vmatpush3.bf16.msra.mxu0 %v441_v1  ;;  %396 = vmatpush3.bf16.msra.mxu1 %v442_v4  ;;  %v446_v8 = vld [vmem:[%s661_s3 + $0x20] sm:$0xff]   ;;  %v448_v10 = vld [vmem:[%s661_s3 + $0x30] sm:$0xff]   ;;  %v449_v11 = vld [vmem:[%s661_s3 + $0x38] sm:$0xff]  }
  0x17   :  { %415 = vmatprep.subr.bf16.mxu0 %v511_v0  ;;  %397 = vmatprep.subr.bf16.mxu1 %v511_v0  ;;  %v450_v12 = vld [vmem:[%s663_s5] sm:$0xff]   ;;  %v451_v13 = vld [vmem:[%s663_s5 + $0x8] sm:$0xff]   ;;  %v452_v14 = vld [vmem:[%s663_s5 + $0x10] sm:$0xff]  }
  0x18   :  { %v453_v15 = vld [vmem:[%s663_s5 + $0x18] sm:$0xff]   ;;  %v454_v16 = vld [vmem:[%s663_s5 + $0x20] sm:$0xff]   ;;  %v455_v17 = vld [vmem:[%s663_s5 + $0x28] sm:$0xff]  }
  0x19   :  { %392 = vmatmul.mubr.msk.bf16.vlgmr.msra.gmra.mrb[0].mxu0 %vm59_vm1, %v43_v3  ;;  %v348_v18 = vld [vmem:[%s660_s2] ss:$0 sm:$0xff]  ;;  %v456_v26 = vld [vmem:[%s663_s5 + $0x30] sm:$0xff]   ;;  %v457_v27 = vld [vmem:[%s663_s5 + $0x38] sm:$0xff]   ;;  %s513_s5 = smov [#allocation5]  }
  0x1a   :  { %431 = vmatprep.mubr.msk.bf16.mxu0 %vm512_vm0, %v511_v0  ;;  %398 = vmatpush3.bf16.msra.mxu1 %v443_v5  ;;  %v351_v28 = vld [vmem:[%s662_s4] ss:$0 sm:$0xff]  ;;  %s339_s4 = sshll.u32 %s513_s5, 4  ;;  %s340_s4 = int_to_ptr.vmem [resolvable:$true] %s339_s4 }
  0x1b   :  { %399 = vmatprep.subr.bf16.mxu1 %v511_v0  ;;  %416 = vmatpush3.bf16.msra.mxu0 %v450_v12  ;;  %v360_v36 = vld [vmem:[%s664_s6] ss:$0 sm:$0xff]  ;;  %s482_s26 = scalar_lea.vmem %s340_s4, 128  ;;  %p487_p9 = scmp.lt.s32.totalorder %s340_s4, %s340_s4 }
  0x1c   :  { %417 = vmatprep.subr.bf16.mxu0 %v511_v0  ;;  %p483_p8 = scmp.ne.s32.totalorder %s340_s4, %s482_s26  ;;  %p488_p10 = scmp.lt.s32.totalorder %s482_s26, %s482_s26 }
  0x1e   :  { %400 = vmatpush3.bf16.msra.mxu1 %v444_v6  ;;  %p489_p11 = por %p488_p10, %p487_p9 }
  0x1f   :  { %401 = vmatprep.subr.bf16.mxu1 %v511_v0  ;;  %418 = vmatpush3.bf16.msra.mxu0 %v451_v13 }
  0x20   :  { %419 = vmatprep.subr.bf16.mxu0 %v511_v0  ;;  %p490_p12 = pnand %p489_p11, %p483_p8 }
  0x22   :  { %402 = vmatpush3.bf16.msra.mxu1 %v445_v7 }
  0x23   :  { %403 = vmatprep.subr.bf16.mxu1 %v511_v0  ;;  %420 = vmatpush3.bf16.msra.mxu0 %v452_v14 }
  0x24   :  { %421 = vmatprep.subr.bf16.mxu0 %v511_v0 }
  0x26   :  { %404 = vmatpush3.bf16.msra.mxu1 %v446_v8 }
  0x27   :  { %405 = vmatprep.subr.bf16.mxu1 %v511_v0  ;;  %422 = vmatpush3.bf16.msra.mxu0 %v453_v15 }
  0x28   :  { %423 = vmatprep.subr.bf16.mxu0 %v511_v0 }
  0x2a   :  { %406 = vmatpush3.bf16.msra.mxu1 %v447_v9 }
  0x2b   :  { %407 = vmatprep.subr.bf16.mxu1 %v511_v0  ;;  %424 = vmatpush3.bf16.msra.mxu0 %v454_v16 }
  0x2c   :  { %425 = vmatprep.subr.bf16.mxu0 %v511_v0 }
  0x2e   :  { %408 = vmatpush3.bf16.msra.mxu1 %v448_v10 }
  0x2f   :  { %409 = vmatprep.subr.bf16.mxu1 %v511_v0  ;;  %426 = vmatpush3.bf16.msra.mxu0 %v455_v17 }
  0x30   :  { %427 = vmatprep.subr.bf16.mxu0 %v511_v0 }
  0x32   :  { %410 = vmatpush3.bf16.msra.mxu1 %v449_v11 }
  0x33   :  { %428 = vmatpush3.bf16.msra.mxu0 %v456_v26 }
  0x34   :  { %429 = vmatprep.subr.bf16.mxu0 %v511_v0 }
  0x37   :  { %430 = vmatpush3.bf16.msra.mxu0 %v457_v27 }
  0xec   :  { %v97_v19 = vpop.f32.mrb[0].mxu0 }
  0xed   :  { %v98_v20 = vadd.f32 %v348_v18, %v97_v19  ;;  %v393_v21 = vpop.f32.mrb[1].mxu0 }
  0xee   :  { %v100_v22 = vpop.f32.mrb[2].mxu0 }
  0xef   :  { %v103_v23 = vmax.f32 %v98_v20, 0.0  ;;  %v394_v24 = vpop.f32.mrb[3].mxu0 }
  0xf1   :  { %v104_v25 = vpack.c.bf16 %v103_v23, %v103_v23 }
  0xf3   :  { %412 = vmatmul.mubr.bf16.vlgmr.msra.gmra.mrb[0].mxu1 %v104_v25 }
 0x1c6   :  { %v210_v29 = vpop.f32.mrb[0].mxu1 }
 0x1c7   :  { %v211_v30 = vadd.f32 %v351_v28, %v210_v29  ;;  %v413_v31 = vpop.f32.mrb[1].mxu1 }
 0x1c8   :  { %v213_v32 = vpop.f32.mrb[2].mxu1 }
 0x1c9   :  { %v216_v33 = vmax.f32 %v211_v30, 0.0  ;;  %v414_v34 = vpop.f32.mrb[3].mxu1 }
 0x1cb   :  { %v217_v35 = vpack.c.bf16 %v216_v33, %v216_v33 }
 0x1cd   :  { %432 = vmatmul.mubr.bf16.vlgmr.msra.gmra.mrb[4].mxu0 %v217_v35 }
 0x2a0   :  { %v323_v37 = vpop.f32.mrb[4].mxu0 }
 0x2a1   :  { %v324_v38 = vadd.f32 %v360_v36, %v323_v37  ;;  %v433_v39 = vpop.f32.mrb[5].mxu0 }
 0x2a2   :  { %v326_v40 = vpop.f32.mrb[6].mxu0 }
 0x2a3   :  { %458 = vtanh.f32 %v324_v38  ;;  %v434_v41 = vpop.f32.mrb[7].mxu0 }
 0x2ad   :  { %v459_v42 = vpop.eup %458 }
 0x2ae   :  { %v330_v43 = vmul.f32 2.0, %v459_v42 }
 0x2b0   :  { %332 = vst.msk [vmem:[#allocation5] sm:$0xff] %vm331_vm2, %v330_v43 }
 0x2b1   :  { %493 = shalt.err (!%p490_p12)
}
 0x2b2   :  { %s494_s28 = scalar_lea.hbm %s665_s7, 128 }
 0x2b3   :  { %p495_p13 = scmp.ne.s32.totalorder %s665_s7, %s494_s28  ;;  %p498_p0 = scmp.lt.u32.totalorder %s494_s28, %s665_s7 }
 0x2b5   :  { %p500_p1 = pnand %p498_p0, %p495_p13 }
 0x2b7   :  { %503 = shalt.err (!%p500_p1)
}
 0x2b8   :  { %342 = dma.vmem_to_hbm [thread:$0]  %s340_s4, 128, %s665_s7, [#allocation4]  }
 0x2b9   :  { %506 = dma.done.wait [#allocation4], 128  }
 0x2ba   :  { %507 = vsyncadd [#allocation4], 4294967168 }
 0x2bb   :  { %346 = vsyncpa [#allocation3], 1 }
 0x2bc   :  { %347 = vsyncpa [#allocation4], 1 }

</bundles_post_ra>
